<compile_context>
chip_gen: v7x
topology: tpu7x:2x2x1
jax: 0.10.0
libtpu: 0.0.40
codegen_flags: <defaults>
</compile_context>

<pallas_src>
import numpy as np

import jax
import jax.numpy as jnp
from jax.experimental import pallas as pl
from jax.experimental.pallas import tpu as pltpu

SELU_ALPHA = 1.6732632423543772
SELU_SCALE = 1.0507009873554805

_STRIDE = 2      # fixed by the module: Conv2d(..., stride=2, padding=1)
_PAD = 1
_SUBLANE = 8

_VMEM_FULL = pl.BlockSpec(memory_space=pltpu.MemorySpace.VMEM)


def _ru(x, m):
    return (x + m - 1) // m * m


def _selu_f32(x):
    # SELU in f32 (v5e VPU/EUP have no bf16 path); clamp before exp to avoid overflow.
    neg = jnp.minimum(x, 0.0)
    return SELU_SCALE * jnp.where(x > 0.0, x, SELU_ALPHA * (jnp.exp(neg) - 1.0))


# ---------------------------------------------------------------------------
# Fused encoder kernel: conv+SELU stack, adaptive avg-pool and Linear head.
# ---------------------------------------------------------------------------
def _make_encoder_kernel(n_layers):
    def kernel(*refs):
        x_ref = refs[0]
        layer_refs = refs[1:1 + 3 * n_layers]
        prow_ref, g_ref, bfc_ref, o_ref = refs[1 + 3 * n_layers:]

        a = x_ref[...].astype(jnp.bfloat16)                 # (N*H, W*C), lane-dense
        for l in range(n_layers):
            r_ref, m_ref, b_ref = layer_refs[3 * l:3 * l + 3]
            k = r_ref.shape[0]                              # kernel height (3 or 4)
            acc = b_ref[...]                                # (1, Wout*Cout) f32
            for kh in range(k):                             # fully unrolled (k <= 4)
                # 0/1 row gather (exact in bf16); f32 MXU accumulation.
                rows = jnp.dot(r_ref[kh], a,
                               preferred_element_type=jnp.float32).astype(jnp.bfloat16)
                # Column gather + filter taps of kernel-row kh, folded into one matmul.
                acc = acc + jnp.dot(rows, m_ref[kh],
                                    preferred_element_type=jnp.float32)
            a = _selu_f32(acc).astype(jnp.bfloat16)         # (N*Hout, Wout*Cout)

        # AdaptiveAvgPool2d(1) + Linear: (Prow @ A_last) @ G + b_fc; the 1/S pool
        # scale is pre-folded into G.  bf16 MXU operands, f32 accumulation.
        rowsum = jnp.dot(prow_ref[...], a, preferred_element_type=jnp.float32)
        out = jnp.dot(rowsum.astype(jnp.bfloat16), g_ref[...],
                      preferred_element_type=jnp.float32) + bfc_ref[...]
        o_ref[...] = out[:o_ref.shape[0]]                   # drop padded pool rows

    return kernel


# ---------------------------------------------------------------------------
# One-time parameter packing (outside the jitted forward).
# ---------------------------------------------------------------------------
def pack_encoder_params(params, batch, img_size):
    """Pack PyTorch-layout Encoder params into the fused kernel's operands.

    Per conv layer (stride=2, padding=1, as in the module):
      r : (k, rows_out_pad, rows_in)   0/1 row-gather matrices, bf16 (exact)
      m : (k, Win*Cin, Wout*Cout)      column-gather x filter taps, bf16
      b : (1, Wout*Cout)               bias tiled over Wout, f32
    Pool + Linear head:
      prow : (ru8(batch), rows_last)   0/1 per-sample row-sum matrix, bf16
      g    : (Wlast*Clast, z_dim)      fc weight with 1/(Hlast*Wlast) folded in, bf16
      bfc  : (1, z_dim)                fc bias, f32

    Row dims are padded to multiples of 8 (sublane granularity).  Padded rows
    produce SELU(bias) values but are ignored: every downstream gather / pool
    matrix has zero columns at those row indices.  The packed arrays are
    batch- and img_size-specialised (like the jitted forward).
    """
    h = w = img_size
    rows_in = batch * img_size                 # rows of the (N*H, W*C) input
    layers = []
    for layer in params["conv"]:
        w_np = np.asarray(jax.device_get(layer["w"]), np.float32)   # (Cout, Cin, k, k)
        b_np = np.asarray(jax.device_get(layer["b"]), np.float32)   # (Cout,)
        cout, cin, k, _ = w_np.shape
        hout = (h + 2 * _PAD - k) // _STRIDE + 1
        wout = (w + 2 * _PAD - k) // _STRIDE + 1
        rows_out_pad = _ru(batch * hout, _SUBLANE)

        r = np.zeros((k, rows_out_pad, rows_in), np.float32)
        m = np.zeros((k, w * cin, wout * cout), np.float32)
        for kh in range(k):
            for bi in range(batch):
                for ho in range(hout):
                    hi = _STRIDE * ho + kh - _PAD
                    if 0 <= hi < h:
                        r[kh, bi * hout + ho, bi * h + hi] = 1.0
            for kw in range(k):
                for wo in range(wout):
                    wi = _STRIDE * wo + kw - _PAD
                    if 0 <= wi < w:
                        m[kh, wi * cin:(wi + 1) * cin,
                          wo * cout:(wo + 1) * cout] = w_np[:, :, kh, kw].T
        layers.append({
            "r": jnp.asarray(r, jnp.bfloat16),
            "m": jnp.asarray(m, jnp.bfloat16),
            "b": jnp.asarray(np.tile(b_np, wout)[None, :], jnp.float32),
        })
        h, w, rows_in = hout, wout, rows_out_pad

    fc_w = np.asarray(jax.device_get(params["fc"]["w"]), np.float32)  # (z, C)
    fc_b = np.asarray(jax.device_get(params["fc"]["b"]), np.float32)  # (z,)
    prow = np.zeros((_ru(batch, _SUBLANE), rows_in), np.float32)
    for bi in range(batch):
        prow[bi, bi * h:(bi + 1) * h] = 1.0
    g = np.tile(fc_w.T / float(h * w), (w, 1))                        # (Wlast*Clast, z)

    return {
        "layers": layers,
        "prow": jnp.asarray(prow, jnp.bfloat16),
        "g": jnp.asarray(g, jnp.bfloat16),
        "bfc": jnp.asarray(fc_b[None, :], jnp.float32),
    }


# ---------------------------------------------------------------------------
# Forward pass: one transpose + one reshape + one pallas_call.
# ---------------------------------------------------------------------------
@jax.jit
def encoder_forward(packed, x_nchw):
    n, c, h, w = x_nchw.shape
    # The only host-side glue: NCHW -> lane-dense (N*H, W*C) 2-D activation.
    x2d = jnp.transpose(x_nchw, (0, 2, 3, 1)).reshape(n * h, w * c)

    layers = packed["layers"]
    operands = [x2d]
    for lyr in layers:
        operands += [lyr["r"], lyr["m"], lyr["b"]]
    operands += [packed["prow"], packed["g"], packed["bfc"]]

    z_dim = packed["bfc"].shape[1]

    # Advisory cost estimate (the model is launch-overhead bound at these shapes).
    flops = 0
    transcendentals = 0
    for lyr in layers:
        k, mo, mi = lyr["r"].shape
        wc_in, wc_out = lyr["m"].shape[1], lyr["m"].shape[2]
        flops += 2 * k * (mo * mi * wc_in + mo * wc_in * wc_out)
        transcendentals += mo * wc_out
    pr, pc = packed["prow"].shape
    gk = packed["g"].shape[0]
    flops += 2 * (pr * pc * gk + pr * gk * z_dim)
    bytes_accessed = sum(int(np.prod(op.shape)) * op.dtype.itemsize for op in operands)
    bytes_accessed += int(n * z_dim * 4)

    return pl.pallas_call(
        _make_encoder_kernel(len(layers)),
        out_shape=jax.ShapeDtypeStruct((n, z_dim), jnp.float32),
        in_specs=[_VMEM_FULL] * len(operands),
        out_specs=_VMEM_FULL,
        cost_estimate=pl.CostEstimate(flops=int(flops),
                                      transcendentals=int(transcendentals),
                                      bytes_accessed=int(bytes_accessed)),
    )(*operands)


# ---------------------------------------------------------------------------
# Encoder parameters (PyTorch layout) & pure-JAX f32 reference.
# ---------------------------------------------------------------------------
def init_encoder_params(key, in_channels, z_dim, base_channels, n_layers):
    """PyTorch-layout params: conv weights (Cout, Cin, k, k), Linear weight (Z, C)."""
    params = {"conv": [], "fc": None}
    ch = in_channels
    for i in range(n_layers):
        out_ch = base_channels * 2 ** i
        kernel = 4 if i < n_layers - 1 else 3
        key, kw_, kb_ = jax.random.split(key, 3)
        w = 0.1 * jax.random.normal(kw_, (out_ch, ch, kernel, kernel), jnp.float32)
        b = 0.1 * jax.random.normal(kb_, (out_ch,), jnp.float32)
        params["conv"].append({"w": w, "b": b})
        ch = out_ch
    key, kw_, kb_ = jax.random.split(key, 3)
    fc_w = 0.1 * jax.random.normal(kw_, (z_dim, ch), jnp.float32)
    fc_b = 0.1 * jax.random.normal(kb_, (z_dim,), jnp.float32)
    params["fc"] = {"w": fc_w, "b": fc_b}
    return params


def encoder_reference(params, x):
    """Faithful f32 reference of the PyTorch module (for correctness checking)."""
    for layer in params["conv"]:
        w, b = layer["w"], layer["b"]
        x = jax.lax.conv_general_dilated(
            x, w, window_strides=(2, 2), padding=((1, 1), (1, 1)),
            dimension_numbers=("NCHW", "OIHW", "NCHW"))
        x = _selu_f32(x + b[None, :, None, None])
    pooled = jnp.mean(x, axis=(2, 3))
    return pooled @ params["fc"]["w"].T + params["fc"]["b"]


if __name__ == "__main__":
    # Shapes consistent with the module: batch=2, in_channels=4, img_size=16,
    # base_channels=8, n_layers=3, z_dim=32.
    batch, in_channels, img_size = 2, 4, 16
    base_channels, n_layers, z_dim = 8, 3, 32

    key = jax.random.PRNGKey(0)
    key, kx = jax.random.split(key)
    x = jax.random.normal(kx, (batch, in_channels, img_size, img_size), jnp.float32)
    params = init_encoder_params(key, in_channels, z_dim, base_channels, n_layers)

    # One-time packing (gather matrices, folded taps, bf16 casts) outside the jit.
    packed = pack_encoder_params(params, batch, img_size)

    out = jax.block_until_ready(encoder_forward(packed, x))
    ref = jax.block_until_ready(encoder_reference(params, x))

    assert out.shape == (batch, z_dim)
    # MXU operands are bf16 (f32 accumulation), so compare against the f32
    # reference with a correspondingly loosened tolerance.
    np.testing.assert_allclose(np.asarray(out), np.asarray(ref), rtol=5e-2, atol=5e-2)
    print("KERNEL_OK")
</pallas_src>

<mosaic_0001>
module attributes {stable_mosaic.version = 11 : i64} {
  func.func @kernel(%arg0: memref<32x64xf32, #tpu.memory_space<vmem>>, %arg1: memref<4x16x32xbf16, #tpu.memory_space<vmem>>, %arg2: memref<4x64x64xbf16, #tpu.memory_space<vmem>>, %arg3: memref<1x64xf32, #tpu.memory_space<vmem>>, %arg4: memref<4x8x16xbf16, #tpu.memory_space<vmem>>, %arg5: memref<4x64x64xbf16, #tpu.memory_space<vmem>>, %arg6: memref<1x64xf32, #tpu.memory_space<vmem>>, %arg7: memref<3x8x8xbf16, #tpu.memory_space<vmem>>, %arg8: memref<3x64x64xbf16, #tpu.memory_space<vmem>>, %arg9: memref<1x64xf32, #tpu.memory_space<vmem>>, %arg10: memref<8x8xbf16, #tpu.memory_space<vmem>>, %arg11: memref<64x32xbf16, #tpu.memory_space<vmem>>, %arg12: memref<1x32xf32, #tpu.memory_space<vmem>>, %arg13: memref<2x32xf32, #tpu.memory_space<vmem>>) attributes {dimension_semantics = [], scalar_prefetch = 0 : i64, scratch_operands = 0 : i64, tpu.core_type = #tpu.core_type<tc>} {
    %c0 = arith.constant 0 : index
    %c0_0 = arith.constant 0 : index
    %0 = vector.load %arg0[%c0, %c0_0] : memref<32x64xf32, #tpu.memory_space<vmem>>, vector<32x64xf32>
    %1 = arith.truncf %0 : vector<32x64xf32> to vector<32x64xbf16>
    %c0_1 = arith.constant 0 : index
    %c0_2 = arith.constant 0 : index
    %2 = vector.load %arg3[%c0_1, %c0_2] : memref<1x64xf32, #tpu.memory_space<vmem>>, vector<1x64xf32>
    %c0_3 = arith.constant 0 : index
    %c0_4 = arith.constant 0 : index
    %c0_5 = arith.constant 0 : index
    %3 = vector.load %arg1[%c0_3, %c0_4, %c0_5] : memref<4x16x32xbf16, #tpu.memory_space<vmem>>, vector<1x16x32xbf16>
    %4 = vector.shape_cast %3 : vector<1x16x32xbf16> to vector<16x32xbf16>
    %cst = arith.constant dense<0.000000e+00> : vector<16x64xf32>
    %5 = tpu.matmul %4, %1, %cst {dimension_numbers = #tpu.dot_dimension_numbers<[1], [0], [0], [1], [0, 0, 1, 1], [], []>} : vector<16x32xbf16>, vector<32x64xbf16>, vector<16x64xf32> -> vector<16x64xf32>
    %6 = arith.truncf %5 : vector<16x64xf32> to vector<16x64xbf16>
    %c0_6 = arith.constant 0 : index
    %c0_7 = arith.constant 0 : index
    %c0_8 = arith.constant 0 : index
    %7 = vector.load %arg2[%c0_6, %c0_7, %c0_8] : memref<4x64x64xbf16, #tpu.memory_space<vmem>>, vector<1x64x64xbf16>
    %8 = vector.shape_cast %7 : vector<1x64x64xbf16> to vector<64x64xbf16>
    %cst_9 = arith.constant dense<0.000000e+00> : vector<16x64xf32>
    %9 = tpu.matmul %6, %8, %cst_9 {dimension_numbers = #tpu.dot_dimension_numbers<[1], [0], [0], [1], [0, 0, 1, 1], [], []>} : vector<16x64xbf16>, vector<64x64xbf16>, vector<16x64xf32> -> vector<16x64xf32>
    %10 = vector.broadcast %2 : vector<1x64xf32> to vector<16x64xf32>
    %11 = arith.addf %10, %9 : vector<16x64xf32>
    %c1 = arith.constant 1 : index
    %c0_10 = arith.constant 0 : index
    %c0_11 = arith.constant 0 : index
    %12 = vector.load %arg1[%c1, %c0_10, %c0_11] : memref<4x16x32xbf16, #tpu.memory_space<vmem>>, vector<1x16x32xbf16>
    %13 = vector.shape_cast %12 : vector<1x16x32xbf16> to vector<16x32xbf16>
    %cst_12 = arith.constant dense<0.000000e+00> : vector<16x64xf32>
    %14 = tpu.matmul %13, %1, %cst_12 {dimension_numbers = #tpu.dot_dimension_numbers<[1], [0], [0], [1], [0, 0, 1, 1], [], []>} : vector<16x32xbf16>, vector<32x64xbf16>, vector<16x64xf32> -> vector<16x64xf32>
    %15 = arith.truncf %14 : vector<16x64xf32> to vector<16x64xbf16>
    %c1_13 = arith.constant 1 : index
    %c0_14 = arith.constant 0 : index
    %c0_15 = arith.constant 0 : index
    %16 = vector.load %arg2[%c1_13, %c0_14, %c0_15] : memref<4x64x64xbf16, #tpu.memory_space<vmem>>, vector<1x64x64xbf16>
    %17 = vector.shape_cast %16 : vector<1x64x64xbf16> to vector<64x64xbf16>
    %cst_16 = arith.constant dense<0.000000e+00> : vector<16x64xf32>
    %18 = tpu.matmul %15, %17, %cst_16 {dimension_numbers = #tpu.dot_dimension_numbers<[1], [0], [0], [1], [0, 0, 1, 1], [], []>} : vector<16x64xbf16>, vector<64x64xbf16>, vector<16x64xf32> -> vector<16x64xf32>
    %19 = arith.addf %11, %18 : vector<16x64xf32>
    %c2 = arith.constant 2 : index
    %c0_17 = arith.constant 0 : index
    %c0_18 = arith.constant 0 : index
    %20 = vector.load %arg1[%c2, %c0_17, %c0_18] : memref<4x16x32xbf16, #tpu.memory_space<vmem>>, vector<1x16x32xbf16>
    %21 = vector.shape_cast %20 : vector<1x16x32xbf16> to vector<16x32xbf16>
    %cst_19 = arith.constant dense<0.000000e+00> : vector<16x64xf32>
    %22 = tpu.matmul %21, %1, %cst_19 {dimension_numbers = #tpu.dot_dimension_numbers<[1], [0], [0], [1], [0, 0, 1, 1], [], []>} : vector<16x32xbf16>, vector<32x64xbf16>, vector<16x64xf32> -> vector<16x64xf32>
    %23 = arith.truncf %22 : vector<16x64xf32> to vector<16x64xbf16>
    %c2_20 = arith.constant 2 : index
    %c0_21 = arith.constant 0 : index
    %c0_22 = arith.constant 0 : index
    %24 = vector.load %arg2[%c2_20, %c0_21, %c0_22] : memref<4x64x64xbf16, #tpu.memory_space<vmem>>, vector<1x64x64xbf16>
    %25 = vector.shape_cast %24 : vector<1x64x64xbf16> to vector<64x64xbf16>
    %cst_23 = arith.constant dense<0.000000e+00> : vector<16x64xf32>
    %26 = tpu.matmul %23, %25, %cst_23 {dimension_numbers = #tpu.dot_dimension_numbers<[1], [0], [0], [1], [0, 0, 1, 1], [], []>} : vector<16x64xbf16>, vector<64x64xbf16>, vector<16x64xf32> -> vector<16x64xf32>
    %27 = arith.addf %19, %26 : vector<16x64xf32>
    %c3 = arith.constant 3 : index
    %c0_24 = arith.constant 0 : index
    %c0_25 = arith.constant 0 : index
    %28 = vector.load %arg1[%c3, %c0_24, %c0_25] : memref<4x16x32xbf16, #tpu.memory_space<vmem>>, vector<1x16x32xbf16>
    %29 = vector.shape_cast %28 : vector<1x16x32xbf16> to vector<16x32xbf16>
    %cst_26 = arith.constant dense<0.000000e+00> : vector<16x64xf32>
    %30 = tpu.matmul %29, %1, %cst_26 {dimension_numbers = #tpu.dot_dimension_numbers<[1], [0], [0], [1], [0, 0, 1, 1], [], []>} : vector<16x32xbf16>, vector<32x64xbf16>, vector<16x64xf32> -> vector<16x64xf32>
    %31 = arith.truncf %30 : vector<16x64xf32> to vector<16x64xbf16>
    %c3_27 = arith.constant 3 : index
    %c0_28 = arith.constant 0 : index
    %c0_29 = arith.constant 0 : index
    %32 = vector.load %arg2[%c3_27, %c0_28, %c0_29] : memref<4x64x64xbf16, #tpu.memory_space<vmem>>, vector<1x64x64xbf16>
    %33 = vector.shape_cast %32 : vector<1x64x64xbf16> to vector<64x64xbf16>
    %cst_30 = arith.constant dense<0.000000e+00> : vector<16x64xf32>
    %34 = tpu.matmul %31, %33, %cst_30 {dimension_numbers = #tpu.dot_dimension_numbers<[1], [0], [0], [1], [0, 0, 1, 1], [], []>} : vector<16x64xbf16>, vector<64x64xbf16>, vector<16x64xf32> -> vector<16x64xf32>
    %35 = arith.addf %27, %34 : vector<16x64xf32>
    %cst_31 = arith.constant 0.000000e+00 : f32
    %36 = vector.broadcast %cst_31 : f32 to vector<16x64xf32>
    %37 = arith.minimumf %35, %36 : vector<16x64xf32>
    %cst_32 = arith.constant 0.000000e+00 : f32
    %38 = vector.broadcast %cst_32 : f32 to vector<16x64xf32>
    %39 = arith.cmpf ogt, %35, %38 : vector<16x64xf32>
    %40 = math.exp %37 : vector<16x64xf32>
    %cst_33 = arith.constant 1.000000e+00 : f32
    %41 = vector.broadcast %cst_33 : f32 to vector<16x64xf32>
    %42 = arith.subf %40, %41 : vector<16x64xf32>
    %cst_34 = arith.constant 1.67326319 : f32
    %43 = vector.broadcast %cst_34 : f32 to vector<16x64xf32>
    %44 = arith.mulf %43, %42 : vector<16x64xf32>
    %45 = arith.select %39, %35, %44 : vector<16x64xi1>, vector<16x64xf32>
    %cst_35 = arith.constant 1.05070102 : f32
    %46 = vector.broadcast %cst_35 : f32 to vector<16x64xf32>
    %47 = arith.mulf %46, %45 : vector<16x64xf32>
    %48 = arith.truncf %47 : vector<16x64xf32> to vector<16x64xbf16>
    %c0_36 = arith.constant 0 : index
    %c0_37 = arith.constant 0 : index
    %49 = vector.load %arg6[%c0_36, %c0_37] : memref<1x64xf32, #tpu.memory_space<vmem>>, vector<1x64xf32>
    %c0_38 = arith.constant 0 : index
    %c0_39 = arith.constant 0 : index
    %c0_40 = arith.constant 0 : index
    %50 = vector.load %arg4[%c0_38, %c0_39, %c0_40] : memref<4x8x16xbf16, #tpu.memory_space<vmem>>, vector<1x8x16xbf16>
    %51 = vector.shape_cast %50 : vector<1x8x16xbf16> to vector<8x16xbf16>
    %cst_41 = arith.constant dense<0.000000e+00> : vector<8x64xf32>
    %52 = tpu.matmul %51, %48, %cst_41 {dimension_numbers = #tpu.dot_dimension_numbers<[1], [0], [0], [1], [0, 0, 1, 1], [], []>} : vector<8x16xbf16>, vector<16x64xbf16>, vector<8x64xf32> -> vector<8x64xf32>
    %53 = arith.truncf %52 : vector<8x64xf32> to vector<8x64xbf16>
    %c0_42 = arith.constant 0 : index
    %c0_43 = arith.constant 0 : index
    %c0_44 = arith.constant 0 : index
    %54 = vector.load %arg5[%c0_42, %c0_43, %c0_44] : memref<4x64x64xbf16, #tpu.memory_space<vmem>>, vector<1x64x64xbf16>
    %55 = vector.shape_cast %54 : vector<1x64x64xbf16> to vector<64x64xbf16>
    %cst_45 = arith.constant dense<0.000000e+00> : vector<8x64xf32>
    %56 = tpu.matmul %53, %55, %cst_45 {dimension_numbers = #tpu.dot_dimension_numbers<[1], [0], [0], [1], [0, 0, 1, 1], [], []>} : vector<8x64xbf16>, vector<64x64xbf16>, vector<8x64xf32> -> vector<8x64xf32>
    %57 = vector.broadcast %49 : vector<1x64xf32> to vector<8x64xf32>
    %58 = arith.addf %57, %56 : vector<8x64xf32>
    %c1_46 = arith.constant 1 : index
    %c0_47 = arith.constant 0 : index
    %c0_48 = arith.constant 0 : index
    %59 = vector.load %arg4[%c1_46, %c0_47, %c0_48] : memref<4x8x16xbf16, #tpu.memory_space<vmem>>, vector<1x8x16xbf16>
    %60 = vector.shape_cast %59 : vector<1x8x16xbf16> to vector<8x16xbf16>
    %cst_49 = arith.constant dense<0.000000e+00> : vector<8x64xf32>
    %61 = tpu.matmul %60, %48, %cst_49 {dimension_numbers = #tpu.dot_dimension_numbers<[1], [0], [0], [1], [0, 0, 1, 1], [], []>} : vector<8x16xbf16>, vector<16x64xbf16>, vector<8x64xf32> -> vector<8x64xf32>
    %62 = arith.truncf %61 : vector<8x64xf32> to vector<8x64xbf16>
    %c1_50 = arith.constant 1 : index
    %c0_51 = arith.constant 0 : index
    %c0_52 = arith.constant 0 : index
    %63 = vector.load %arg5[%c1_50, %c0_51, %c0_52] : memref<4x64x64xbf16, #tpu.memory_space<vmem>>, vector<1x64x64xbf16>
    %64 = vector.shape_cast %63 : vector<1x64x64xbf16> to vector<64x64xbf16>
    %cst_53 = arith.constant dense<0.000000e+00> : vector<8x64xf32>
    %65 = tpu.matmul %62, %64, %cst_53 {dimension_numbers = #tpu.dot_dimension_numbers<[1], [0], [0], [1], [0, 0, 1, 1], [], []>} : vector<8x64xbf16>, vector<64x64xbf16>, vector<8x64xf32> -> vector<8x64xf32>
    %66 = arith.addf %58, %65 : vector<8x64xf32>
    %c2_54 = arith.constant 2 : index
    %c0_55 = arith.constant 0 : index
    %c0_56 = arith.constant 0 : index
    %67 = vector.load %arg4[%c2_54, %c0_55, %c0_56] : memref<4x8x16xbf16, #tpu.memory_space<vmem>>, vector<1x8x16xbf16>
    %68 = vector.shape_cast %67 : vector<1x8x16xbf16> to vector<8x16xbf16>
    %cst_57 = arith.constant dense<0.000000e+00> : vector<8x64xf32>
    %69 = tpu.matmul %68, %48, %cst_57 {dimension_numbers = #tpu.dot_dimension_numbers<[1], [0], [0], [1], [0, 0, 1, 1], [], []>} : vector<8x16xbf16>, vector<16x64xbf16>, vector<8x64xf32> -> vector<8x64xf32>
    %70 = arith.truncf %69 : vector<8x64xf32> to vector<8x64xbf16>
    %c2_58 = arith.constant 2 : index
    %c0_59 = arith.constant 0 : index
    %c0_60 = arith.constant 0 : index
    %71 = vector.load %arg5[%c2_58, %c0_59, %c0_60] : memref<4x64x64xbf16, #tpu.memory_space<vmem>>, vector<1x64x64xbf16>
    %72 = vector.shape_cast %71 : vector<1x64x64xbf16> to vector<64x64xbf16>
    %cst_61 = arith.constant dense<0.000000e+00> : vector<8x64xf32>
    %73 = tpu.matmul %70, %72, %cst_61 {dimension_numbers = #tpu.dot_dimension_numbers<[1], [0], [0], [1], [0, 0, 1, 1], [], []>} : vector<8x64xbf16>, vector<64x64xbf16>, vector<8x64xf32> -> vector<8x64xf32>
    %74 = arith.addf %66, %73 : vector<8x64xf32>
    %c3_62 = arith.constant 3 : index
    %c0_63 = arith.constant 0 : index
    %c0_64 = arith.constant 0 : index
    %75 = vector.load %arg4[%c3_62, %c0_63, %c0_64] : memref<4x8x16xbf16, #tpu.memory_space<vmem>>, vector<1x8x16xbf16>
    %76 = vector.shape_cast %75 : vector<1x8x16xbf16> to vector<8x16xbf16>
    %cst_65 = arith.constant dense<0.000000e+00> : vector<8x64xf32>
    %77 = tpu.matmul %76, %48, %cst_65 {dimension_numbers = #tpu.dot_dimension_numbers<[1], [0], [0], [1], [0, 0, 1, 1], [], []>} : vector<8x16xbf16>, vector<16x64xbf16>, vector<8x64xf32> -> vector<8x64xf32>
    %78 = arith.truncf %77 : vector<8x64xf32> to vector<8x64xbf16>
    %c3_66 = arith.constant 3 : index
    %c0_67 = arith.constant 0 : index
    %c0_68 = arith.constant 0 : index
    %79 = vector.load %arg5[%c3_66, %c0_67, %c0_68] : memref<4x64x64xbf16, #tpu.memory_space<vmem>>, vector<1x64x64xbf16>
    %80 = vector.shape_cast %79 : vector<1x64x64xbf16> to vector<64x64xbf16>
    %cst_69 = arith.constant dense<0.000000e+00> : vector<8x64xf32>
    %81 = tpu.matmul %78, %80, %cst_69 {dimension_numbers = #tpu.dot_dimension_numbers<[1], [0], [0], [1], [0, 0, 1, 1], [], []>} : vector<8x64xbf16>, vector<64x64xbf16>, vector<8x64xf32> -> vector<8x64xf32>
    %82 = arith.addf %74, %81 : vector<8x64xf32>
    %cst_70 = arith.constant 0.000000e+00 : f32
    %83 = vector.broadcast %cst_70 : f32 to vector<8x64xf32>
    %84 = arith.minimumf %82, %83 : vector<8x64xf32>
    %cst_71 = arith.constant 0.000000e+00 : f32
    %85 = vector.broadcast %cst_71 : f32 to vector<8x64xf32>
    %86 = arith.cmpf ogt, %82, %85 : vector<8x64xf32>
    %87 = math.exp %84 : vector<8x64xf32>
    %cst_72 = arith.constant 1.000000e+00 : f32
    %88 = vector.broadcast %cst_72 : f32 to vector<8x64xf32>
    %89 = arith.subf %87, %88 : vector<8x64xf32>
    %cst_73 = arith.constant 1.67326319 : f32
    %90 = vector.broadcast %cst_73 : f32 to vector<8x64xf32>
    %91 = arith.mulf %90, %89 : vector<8x64xf32>
    %92 = arith.select %86, %82, %91 : vector<8x64xi1>, vector<8x64xf32>
    %cst_74 = arith.constant 1.05070102 : f32
    %93 = vector.broadcast %cst_74 : f32 to vector<8x64xf32>
    %94 = arith.mulf %93, %92 : vector<8x64xf32>
    %95 = arith.truncf %94 : vector<8x64xf32> to vector<8x64xbf16>
    %c0_75 = arith.constant 0 : index
    %c0_76 = arith.constant 0 : index
    %96 = vector.load %arg9[%c0_75, %c0_76] : memref<1x64xf32, #tpu.memory_space<vmem>>, vector<1x64xf32>
    %c0_77 = arith.constant 0 : index
    %c0_78 = arith.constant 0 : index
    %c0_79 = arith.constant 0 : index
    %97 = vector.load %arg7[%c0_77, %c0_78, %c0_79] : memref<3x8x8xbf16, #tpu.memory_space<vmem>>, vector<1x8x8xbf16>
    %98 = vector.shape_cast %97 : vector<1x8x8xbf16> to vector<8x8xbf16>
    %cst_80 = arith.constant dense<0.000000e+00> : vector<8x64xf32>
    %99 = tpu.matmul %98, %95, %cst_80 {dimension_numbers = #tpu.dot_dimension_numbers<[1], [0], [0], [1], [0, 0, 1, 1], [], []>} : vector<8x8xbf16>, vector<8x64xbf16>, vector<8x64xf32> -> vector<8x64xf32>
    %100 = arith.truncf %99 : vector<8x64xf32> to vector<8x64xbf16>
    %c0_81 = arith.constant 0 : index
    %c0_82 = arith.constant 0 : index
    %c0_83 = arith.constant 0 : index
    %101 = vector.load %arg8[%c0_81, %c0_82, %c0_83] : memref<3x64x64xbf16, #tpu.memory_space<vmem>>, vector<1x64x64xbf16>
    %102 = vector.shape_cast %101 : vector<1x64x64xbf16> to vector<64x64xbf16>
    %cst_84 = arith.constant dense<0.000000e+00> : vector<8x64xf32>
    %103 = tpu.matmul %100, %102, %cst_84 {dimension_numbers = #tpu.dot_dimension_numbers<[1], [0], [0], [1], [0, 0, 1, 1], [], []>} : vector<8x64xbf16>, vector<64x64xbf16>, vector<8x64xf32> -> vector<8x64xf32>
    %104 = vector.broadcast %96 : vector<1x64xf32> to vector<8x64xf32>
    %105 = arith.addf %104, %103 : vector<8x64xf32>
    %c1_85 = arith.constant 1 : index
    %c0_86 = arith.constant 0 : index
    %c0_87 = arith.constant 0 : index
    %106 = vector.load %arg7[%c1_85, %c0_86, %c0_87] : memref<3x8x8xbf16, #tpu.memory_space<vmem>>, vector<1x8x8xbf16>
    %107 = vector.shape_cast %106 : vector<1x8x8xbf16> to vector<8x8xbf16>
    %cst_88 = arith.constant dense<0.000000e+00> : vector<8x64xf32>
    %108 = tpu.matmul %107, %95, %cst_88 {dimension_numbers = #tpu.dot_dimension_numbers<[1], [0], [0], [1], [0, 0, 1, 1], [], []>} : vector<8x8xbf16>, vector<8x64xbf16>, vector<8x64xf32> -> vector<8x64xf32>
    %109 = arith.truncf %108 : vector<8x64xf32> to vector<8x64xbf16>
    %c1_89 = arith.constant 1 : index
    %c0_90 = arith.constant 0 : index
    %c0_91 = arith.constant 0 : index
    %110 = vector.load %arg8[%c1_89, %c0_90, %c0_91] : memref<3x64x64xbf16, #tpu.memory_space<vmem>>, vector<1x64x64xbf16>
    %111 = vector.shape_cast %110 : vector<1x64x64xbf16> to vector<64x64xbf16>
    %cst_92 = arith.constant dense<0.000000e+00> : vector<8x64xf32>
    %112 = tpu.matmul %109, %111, %cst_92 {dimension_numbers = #tpu.dot_dimension_numbers<[1], [0], [0], [1], [0, 0, 1, 1], [], []>} : vector<8x64xbf16>, vector<64x64xbf16>, vector<8x64xf32> -> vector<8x64xf32>
    %113 = arith.addf %105, %112 : vector<8x64xf32>
    %c2_93 = arith.constant 2 : index
    %c0_94 = arith.constant 0 : index
    %c0_95 = arith.constant 0 : index
    %114 = vector.load %arg7[%c2_93, %c0_94, %c0_95] : memref<3x8x8xbf16, #tpu.memory_space<vmem>>, vector<1x8x8xbf16>
    %115 = vector.shape_cast %114 : vector<1x8x8xbf16> to vector<8x8xbf16>
    %cst_96 = arith.constant dense<0.000000e+00> : vector<8x64xf32>
    %116 = tpu.matmul %115, %95, %cst_96 {dimension_numbers = #tpu.dot_dimension_numbers<[1], [0], [0], [1], [0, 0, 1, 1], [], []>} : vector<8x8xbf16>, vector<8x64xbf16>, vector<8x64xf32> -> vector<8x64xf32>
    %117 = arith.truncf %116 : vector<8x64xf32> to vector<8x64xbf16>
    %c2_97 = arith.constant 2 : index
    %c0_98 = arith.constant 0 : index
    %c0_99 = arith.constant 0 : index
    %118 = vector.load %arg8[%c2_97, %c0_98, %c0_99] : memref<3x64x64xbf16, #tpu.memory_space<vmem>>, vector<1x64x64xbf16>
    %119 = vector.shape_cast %118 : vector<1x64x64xbf16> to vector<64x64xbf16>
    %cst_100 = arith.constant dense<0.000000e+00> : vector<8x64xf32>
    %120 = tpu.matmul %117, %119, %cst_100 {dimension_numbers = #tpu.dot_dimension_numbers<[1], [0], [0], [1], [0, 0, 1, 1], [], []>} : vector<8x64xbf16>, vector<64x64xbf16>, vector<8x64xf32> -> vector<8x64xf32>
    %121 = arith.addf %113, %120 : vector<8x64xf32>
    %cst_101 = arith.constant 0.000000e+00 : f32
    %122 = vector.broadcast %cst_101 : f32 to vector<8x64xf32>
    %123 = arith.minimumf %121, %122 : vector<8x64xf32>
    %cst_102 = arith.constant 0.000000e+00 : f32
    %124 = vector.broadcast %cst_102 : f32 to vector<8x64xf32>
    %125 = arith.cmpf ogt, %121, %124 : vector<8x64xf32>
    %126 = math.exp %123 : vector<8x64xf32>
    %cst_103 = arith.constant 1.000000e+00 : f32
    %127 = vector.broadcast %cst_103 : f32 to vector<8x64xf32>
    %128 = arith.subf %126, %127 : vector<8x64xf32>
    %cst_104 = arith.constant 1.67326319 : f32
    %129 = vector.broadcast %cst_104 : f32 to vector<8x64xf32>
    %130 = arith.mulf %129, %128 : vector<8x64xf32>
    %131 = arith.select %125, %121, %130 : vector<8x64xi1>, vector<8x64xf32>
    %cst_105 = arith.constant 1.05070102 : f32
    %132 = vector.broadcast %cst_105 : f32 to vector<8x64xf32>
    %133 = arith.mulf %132, %131 : vector<8x64xf32>
    %134 = arith.truncf %133 : vector<8x64xf32> to vector<8x64xbf16>
    %c0_106 = arith.constant 0 : index
    %c0_107 = arith.constant 0 : index
    %135 = vector.load %arg10[%c0_106, %c0_107] : memref<8x8xbf16, #tpu.memory_space<vmem>>, vector<8x8xbf16>
    %cst_108 = arith.constant dense<0.000000e+00> : vector<8x64xf32>
    %136 = tpu.matmul %135, %134, %cst_108 {dimension_numbers = #tpu.dot_dimension_numbers<[1], [0], [0], [1], [0, 0, 1, 1], [], []>} : vector<8x8xbf16>, vector<8x64xbf16>, vector<8x64xf32> -> vector<8x64xf32>
    %137 = arith.truncf %136 : vector<8x64xf32> to vector<8x64xbf16>
    %c0_109 = arith.constant 0 : index
    %c0_110 = arith.constant 0 : index
    %138 = vector.load %arg11[%c0_109, %c0_110] : memref<64x32xbf16, #tpu.memory_space<vmem>>, vector<64x32xbf16>
    %cst_111 = arith.constant dense<0.000000e+00> : vector<8x32xf32>
    %139 = tpu.matmul %137, %138, %cst_111 {dimension_numbers = #tpu.dot_dimension_numbers<[1], [0], [0], [1], [0, 0, 1, 1], [], []>} : vector<8x64xbf16>, vector<64x32xbf16>, vector<8x32xf32> -> vector<8x32xf32>
    %c0_112 = arith.constant 0 : index
    %c0_113 = arith.constant 0 : index
    %140 = vector.load %arg12[%c0_112, %c0_113] : memref<1x32xf32, #tpu.memory_space<vmem>>, vector<1x32xf32>
    %141 = vector.broadcast %140 : vector<1x32xf32> to vector<8x32xf32>
    %142 = arith.addf %139, %141 : vector<8x32xf32>
    %143 = vector.extract_strided_slice %142 {offsets = [0, 0], sizes = [2, 32], strides = [1, 1]} : vector<8x32xf32> to vector<2x32xf32>
    %c0_114 = arith.constant 0 : index
    %c0_115 = arith.constant 0 : index
    %144 = vector.load %arg13[%c0_114, %c0_115] : memref<2x32xf32, #tpu.memory_space<vmem>>, vector<2x32xf32>
    tpu.vector_store %arg13[%c0_114, %c0_115], %143 {strides = array<i32>} : memref<2x32xf32, #tpu.memory_space<vmem>>, vector<2x32xf32>,
    return
  }
}

</mosaic_0001>

<bundles_post_ra>
// kernel: encoder_forward.1
= control target key start
LH: loop header
LB: loop body
LE: loop exit
PB: predicated region body
PF: predicated region fallthrough
CT: control target
= control target key end

     0   :  { %v2239_v3 = vmov 0.0   ;;  %vm2240_vm0 = vmmov 0   ;;  %vm60_vm1 = vcmask 261120   ;;  %s2666_s0 = inlined_call_operand.vmem [shape: f32[32,64], index: 0, kind: input, shape index: {}]   ;;  %s2667_s1 = inlined_call_operand.vmem [shape: bf16[4,16,32], index: 1, kind: input, shape index: {}]   ;;  %s2668_s2 = inlined_call_operand.vmem [shape: bf16[4,64,64], index: 2, kind: input, shape index: {}]   ;;  %s2669_s3 = inlined_call_operand.vmem [shape: f32[1,64], index: 3, kind: input, shape index: {}]   ;;  %s2670_s4 = inlined_call_operand.vmem [shape: bf16[4,8,16], index: 4, kind: input, shape index: {}]   ;;  %s2671_s5 = inlined_call_operand.vmem [shape: bf16[4,64,64], index: 5, kind: input, shape index: {}]   ;;  %s2672_s6 = inlined_call_operand.vmem [shape: f32[1,64], index: 6, kind: input, shape index: {}]   ;;  %s2673_s7 = inlined_call_operand.vmem [shape: bf16[3,8,8], index: 7, kind: input, shape index: {}]   ;;  %s2674_s8 = inlined_call_operand.vmem [shape: bf16[3,64,64], index: 8, kind: input, shape index: {}]   ;;  %s2675_s9 = inlined_call_operand.vmem [shape: f32[1,64], index: 9, kind: input, shape index: {}]   ;;  %s2676_s10 = inlined_call_operand.vmem [shape: bf16[8,8], index: 10, kind: input, shape index: {}]   ;;  %s2677_s11 = inlined_call_operand.vmem [shape: bf16[64,32], index: 11, kind: input, shape index: {}]   ;;  %s2678_s12 = inlined_call_operand.vmem [shape: f32[1,32], index: 12, kind: input, shape index: {}]   ;;  %s2679_s13 = inlined_call_operand.hbm [shape: f32[2,32], index: 13, kind: output, shape index: {}]  }
   0x1   :  { %v46_v0 = vld [vmem:[%s2666_s0] sm:$0xff]  ;;  %v47_v1 = vld [vmem:[%s2666_s0 + $0x8] sm:$0xff]  ;;  %v48_v2 = vld [vmem:[%s2666_s0 + $0x10] sm:$0xff]  ;;  %1892 = vmatprep.subr.bf16.mxu0 %v2239_v3  ;;  %1896 = vmatprep.mubr.msk.bf16.mxu0 %vm2240_vm0, %v2239_v3 }
   0x2   :  { %v50_v4 = vpack.c.bf16 %v47_v1, %v46_v0  ;;  %v49_v5 = vld [vmem:[%s2666_s0 + $0x18] sm:$0xff]  ;;  %1900 = vmatprep.subr.bf16.mxu1 %v2239_v3  ;;  %1908 = vmatprep.mubr.msk.bf16.mxu1 %vm2240_vm0, %v2239_v3  ;;  %v2155_v7 = vld [vmem:[%s2667_s1] sm:$0xff]   ;;  %v2160_v9 = vld [vmem:[%s2668_s2 + $0x8] sm:$0xff]  }
   0x3   :  { %v51_v6 = vpack.c.bf16 %v49_v5, %v48_v2  ;;  %v2159_v8 = vld [vmem:[%s2668_s2] sm:$0xff]   ;;  %v2161_v10 = vld [vmem:[%s2668_s2 + $0x10] sm:$0xff]   ;;  %v2156_v11 = vld [vmem:[%s2667_s1 + $0x8] sm:$0xff]  }
   0x4   :  { %1893 = vmatpush3.bf16.msra.mxu0 %v50_v4  ;;  %1901 = vmatpush3.bf16.msra.mxu1 %v2159_v8  ;;  %v2157_v12 = vld [vmem:[%s2667_s1 + $0x10] sm:$0xff]   ;;  %v2158_v13 = vld [vmem:[%s2667_s1 + $0x18] sm:$0xff]  }
   0x5   :  { %1894 = vmatprep.subr.bf16.mxu0 %v2239_v3  ;;  %1902 = vmatprep.subr.bf16.mxu1 %v2239_v3 }
   0x8   :  { %1895 = vmatpush3.bf16.msra.mxu0 %v51_v6  ;;  %1903 = vmatpush3.bf16.msra.mxu1 %v2160_v9 }
   0x9   :  { %1912 = vmatprep.subr.bf16.mxu0 %v2239_v3  ;;  %1904 = vmatprep.subr.bf16.mxu1 %v2239_v3 }
   0xb   :  { %1897 = vmatmul.mubr.msk.bf16.vlgmr.msra.gmra.mrb[0].mxu0 %vm60_vm1, %v2155_v7 }
   0xc   :  { %1913 = vmatpush3.bf16.msra.mxu0 %v50_v4  ;;  %1916 = vmatprep.mubr.msk.bf16.mxu0 %vm2240_vm0, %v2239_v3 }
   0xd   :  { %1914 = vmatprep.subr.bf16.mxu0 %v2239_v3  ;;  %1905 = vmatpush3.bf16.msra.mxu1 %v2161_v10 }
   0xe   :  { %1906 = vmatprep.subr.bf16.mxu1 %v2239_v3 }
  0x10   :  { %1915 = vmatpush3.bf16.msra.mxu0 %v51_v6 }
  0x11   :  { %1932 = vmatprep.subr.bf16.mxu0 %v2239_v3 }
  0x13   :  { %1917 = vmatmul.mubr.msk.bf16.vlgmr.msra.gmra.mrb[4].mxu0 %vm60_vm1, %v2156_v11 }
  0x14   :  { %1933 = vmatpush3.bf16.msra.mxu0 %v50_v4  ;;  %1936 = vmatprep.mubr.msk.bf16.mxu0 %vm2240_vm0, %v2239_v3 }
  0x15   :  { %1934 = vmatprep.subr.bf16.mxu0 %v2239_v3 }
  0x18   :  { %1935 = vmatpush3.bf16.msra.mxu0 %v51_v6 }
  0x19   :  { %1952 = vmatprep.subr.bf16.mxu0 %v2239_v3 }
  0x1b   :  { %1937 = vmatmul.mubr.msk.bf16.vlgmr.msra.gmra.mrb[8].mxu0 %vm60_vm1, %v2157_v12 }
  0x1c   :  { %1953 = vmatpush3.bf16.msra.mxu0 %v50_v4  ;;  %1956 = vmatprep.mubr.msk.bf16.mxu0 %vm2240_vm0, %v2239_v3 }
  0x1d   :  { %1954 = vmatprep.subr.bf16.mxu0 %v2239_v3 }
  0x20   :  { %1955 = vmatpush3.bf16.msra.mxu0 %v51_v6 }
  0x21   :  { %1972 = vmatprep.subr.bf16.mxu0 %v2239_v3 }
  0x23   :  { %1957 = vmatmul.mubr.msk.bf16.vlgmr.msra.gmra.mrb[12].mxu0 %vm60_vm1, %v2158_v13 }
  0x24   :  { %1974 = vmatprep.mubr.msk.bf16.mxu0 %vm2240_vm0, %v2239_v3 }
  0x25   :  { %18 = vsyncpa [#allocation3], 0  ;;  %v2162_v14 = vld [vmem:[%s2668_s2 + $0x18] sm:$0xff]   ;;  %vm138_vm2 = vcmask 523264   ;;  %v2163_v18 = vld [vmem:[%s2668_s2 + $0x20] sm:$0xff]   ;;  %vm606_vm5 = vcmask 130048  }
  0x26   :  { %1907 = vmatpush3.bf16.msra.mxu1 %v2162_v14  ;;  %v2164_v21 = vld [vmem:[%s2668_s2 + $0x28] sm:$0xff]   ;;  %v2165_v24 = vld [vmem:[%s2668_s2 + $0x30] sm:$0xff]   ;;  %v2166_v28 = vld [vmem:[%s2668_s2 + $0x38] sm:$0xff]   ;;  %vm1117_vm7 = vcmask 1043456   ;;  %vm1113_vm8 = vcmask 64512   ;;  %s2241_s29 = smov [#allocation2]  }
  0x27   :  { %1920 = vmatprep.subr.bf16.mxu1 %v2239_v3  ;;  %v2167_v31 = vld [vmem:[%s2668_s2 + $0x40] sm:$0xff]   ;;  %v2168_v35 = vld [vmem:[%s2668_s2 + $0x48] sm:$0xff]   ;;  %v2169_v38 = vld [vmem:[%s2668_s2 + $0x50] sm:$0xff]   ;;  %s1637_s30 = sshll.u32 %s2241_s29, 4  ;;  %vm1629_vm10 = vcmask 254976   ;;  %s1638_s30 = int_to_ptr.vmem [resolvable:$true] %s1637_s30 }
  0x28   :  { %v2170_v42 = vld [vmem:[%s2668_s2 + $0x58] sm:$0xff]   ;;  %v2171_v43 = vld [vmem:[%s2668_s2 + $0x60] sm:$0xff]   ;;  %v2172_v44 = vld [vmem:[%s2668_s2 + $0x68] sm:$0xff]   ;;  %p2220_p1 = scmp.lt.s32.totalorder %s1638_s30, %s1638_s30 }
  0x29   :  { %v2173_v45 = vld [vmem:[%s2668_s2 + $0x70] sm:$0xff]   ;;  %v2174_v46 = vld [vmem:[%s2668_s2 + $0x78] sm:$0xff]   ;;  %v1652_v47 = vld [vmem:[%s2669_s3] ss:$0 sm:$0xff] }
  0x2a   :  { %v605_v6 = vld [vmem:[%s2670_s4] sm:$0xf]  ;;  %v1728_v7 = vld [vmem:[%s2670_s4 + $0x8] sm:$0xf]  ;;  %v2177_v10 = vld [vmem:[%s2671_s5 + $0x10] sm:$0xff]  }
  0x2b   :  { %v2175_v8 = vld [vmem:[%s2671_s5] sm:$0xff]   ;;  %v2176_v9 = vld [vmem:[%s2671_s5 + $0x8] sm:$0xff]   ;;  %v2178_v11 = vld [vmem:[%s2671_s5 + $0x18] sm:$0xff]  }
  0x2c   :  { %v1743_v12 = vld [vmem:[%s2670_s4 + $0xc] sm:$0xf] }
  0xde   :  { %v98_v15 = vpop.f32.mrb[0].mxu0 }
  0xdf   :  { %v1898_v16 = vpop.f32.mrb[1].mxu0 }
  0xe0   :  { %v101_v17 = vpop.f32.mrb[2].mxu0 }
  0xe1   :  { %v105_v19 = vpack.c.bf16 %v101_v17, %v98_v15  ;;  %v1899_v20 = vpop.f32.mrb[3].mxu0 }
  0xe2   :  { %v2180_v20 = vld [vmem:[%s2671_s5 + $0x28] sm:$0xff]  }
  0xe3   :  { %1909 = vmatmul.mubr.msk.bf16.vlgmr.msra.gmra.mrb[0].mxu1 %vm138_vm2, %v105_v19  ;;  %v2179_v19 = vld [vmem:[%s2671_s5 + $0x20] sm:$0xff]  }
  0xe4   :  { %1921 = vmatpush3.bf16.msra.mxu1 %v2163_v18  ;;  %1928 = vmatprep.mubr.msk.bf16.mxu1 %vm2240_vm0, %v2239_v3  ;;  %v1713_v18 = vld [vmem:[%s2670_s4 + $0x4] sm:$0xf] }
  0xe5   :  { %1922 = vmatprep.subr.bf16.mxu1 %v2239_v3 }
  0xe6   :  { %v236_v22 = vpop.f32.mrb[4].mxu0 }
  0xe7   :  { %v1918_v23 = vpop.f32.mrb[5].mxu0 }
  0xe8   :  { %1923 = vmatpush3.bf16.msra.mxu1 %v2164_v21  ;;  %v239_v25 = vpop.f32.mrb[6].mxu0  ;;  %v2181_v21 = vld [vmem:[%s2671_s5 + $0x30] sm:$0xff]  }
  0xe9   :  { %1924 = vmatprep.subr.bf16.mxu1 %v2239_v3  ;;  %v243_v26 = vpack.c.bf16 %v239_v25, %v236_v22  ;;  %v1919_v27 = vpop.f32.mrb[7].mxu0  ;;  %v2182_v22 = vld [vmem:[%s2671_s5 + $0x38] sm:$0xff]  }
  0xec   :  { %1925 = vmatpush3.bf16.msra.mxu1 %v2165_v24 }
  0xed   :  { %1926 = vmatprep.subr.bf16.mxu1 %v2239_v3 }
  0xee   :  { %v368_v29 = vpop.f32.mrb[8].mxu0 }
  0xef   :  { %v1938_v30 = vpop.f32.mrb[9].mxu0 }
  0xf0   :  { %1927 = vmatpush3.bf16.msra.mxu1 %v2166_v28  ;;  %v371_v32 = vpop.f32.mrb[10].mxu0 }
  0xf1   :  { %1940 = vmatprep.subr.bf16.mxu1 %v2239_v3  ;;  %v375_v33 = vpack.c.bf16 %v371_v32, %v368_v29  ;;  %v1939_v34 = vpop.f32.mrb[11].mxu0  ;;  %v2183_v32 = vld [vmem:[%s2671_s5 + $0x40] sm:$0xff]  }
  0xf3   :  { %1929 = vmatmul.mubr.msk.bf16.vlgmr.msra.gmra.mrb[0].mxu1 %vm138_vm2, %v243_v26 }
  0xf4   :  { %1941 = vmatpush3.bf16.msra.mxu1 %v2167_v31  ;;  %1948 = vmatprep.mubr.msk.bf16.mxu1 %vm2240_vm0, %v2239_v3 }
  0xf5   :  { %1942 = vmatprep.subr.bf16.mxu1 %v2239_v3 }
  0xf6   :  { %v500_v36 = vpop.f32.mrb[12].mxu0 }
  0xf7   :  { %v1958_v37 = vpop.f32.mrb[13].mxu0 }
  0xf8   :  { %1943 = vmatpush3.bf16.msra.mxu1 %v2168_v35  ;;  %v503_v39 = vpop.f32.mrb[14].mxu0  ;;  %v2184_v37 = vld [vmem:[%s2671_s5 + $0x48] sm:$0xff]  }
  0xf9   :  { %1944 = vmatprep.subr.bf16.mxu1 %v2239_v3  ;;  %v507_v40 = vpack.c.bf16 %v503_v39, %v500_v36  ;;  %v1959_v41 = vpop.f32.mrb[15].mxu0  ;;  %v2186_v39 = vld [vmem:[%s2671_s5 + $0x58] sm:$0xff]  }
  0xfa   :  { %v2187_v41 = vld [vmem:[%s2671_s5 + $0x60] sm:$0xff]  }
  0xfc   :  { %1945 = vmatpush3.bf16.msra.mxu1 %v2169_v38  ;;  %v2185_v38 = vld [vmem:[%s2671_s5 + $0x50] sm:$0xff]  }
  0xfd   :  { %1946 = vmatprep.subr.bf16.mxu1 %v2239_v3 }
 0x100   :  { %1947 = vmatpush3.bf16.msra.mxu1 %v2170_v42  ;;  %v2188_v42 = vld [vmem:[%s2671_s5 + $0x68] sm:$0xff]  }
 0x101   :  { %1960 = vmatprep.subr.bf16.mxu1 %v2239_v3 }
 0x103   :  { %1949 = vmatmul.mubr.msk.bf16.vlgmr.msra.gmra.mrb[0].mxu1 %vm138_vm2, %v375_v33 }
 0x104   :  { %1961 = vmatpush3.bf16.msra.mxu1 %v2171_v43  ;;  %1968 = vmatprep.mubr.msk.bf16.mxu1 %vm2240_vm0, %v2239_v3  ;;  %v2189_v43 = vld [vmem:[%s2671_s5 + $0x70] sm:$0xff]  }
 0x105   :  { %1962 = vmatprep.subr.bf16.mxu1 %v2239_v3 }
 0x108   :  { %1963 = vmatpush3.bf16.msra.mxu1 %v2172_v44  ;;  %v2190_v44 = vld [vmem:[%s2671_s5 + $0x78] sm:$0xff]  }
 0x109   :  { %1964 = vmatprep.subr.bf16.mxu1 %v2239_v3 }
 0x10c   :  { %1965 = vmatpush3.bf16.msra.mxu1 %v2173_v45 }
 0x10d   :  { %1966 = vmatprep.subr.bf16.mxu1 %v2239_v3 }
 0x110   :  { %1967 = vmatpush3.bf16.msra.mxu1 %v2174_v46  ;;  %v1712_v46 = vld [vmem:[%s2672_s6] ss:$0 sm:$0xff] }
 0x111   :  { %2008 = vmatprep.subr.bf16.mxu1 %v2239_v3 }
 0x113   :  { %1969 = vmatmul.mubr.msk.bf16.vlgmr.msra.gmra.mrb[0].mxu1 %vm138_vm2, %v507_v40 }
 0x114   :  { %2010 = vmatprep.mubr.msk.bf16.mxu1 %vm2240_vm0, %v2239_v3 }
 0x1e6   :  { %v578_v48 = vpop.f32.mrb[0].mxu1 }
 0x1e7   :  { %v2116_v49 = vadd.f32 %v1652_v47, %v578_v48  ;;  %v1970_v50 = vpop.f32.mrb[1].mxu1 }
 0x1e8   :  { %v581_v51 = vpop.f32.mrb[2].mxu1 }
 0x1e9   :  { %v587_v52 = vmin.f32 %v2116_v49, 0.0  ;;  %v2117_v53 = vadd.f32 %v1652_v47, %v581_v51  ;;  %v1971_v54 = vpop.f32.mrb[3].mxu1  ;;  %vm589_vm3 = vcmp.gt.f32.partialorder %v2116_v49, 0.0 }
 0x1eb   :  { %v591_v55 = vmul.f32 1.442695, %v587_v52  ;;  %v588_v56 = vmin.f32 %v2117_v53, 0.0  ;;  %vm590_vm4 = vcmp.gt.f32.partialorder %v2117_v53, 0.0 }
 0x1ed   :  { %2207 = vpow2.f32 %v591_v55  ;;  %v593_v57 = vmul.f32 1.442695, %v588_v56 }
 0x1ef   :  { %2209 = vpow2.f32 %v593_v57 }
 0x1f7   :  { %v2208_v58 = vpop.eup %2207 }
 0x1f8   :  { %v1704_v59 = vadd.f32 -1.0, %v2208_v58 }
 0x1f9   :  { %v2210_v60 = vpop.eup %2209 }
 0x1fa   :  { %v597_v61 = vmul.f32 1.6732632, %v1704_v59  ;;  %v1705_v62 = vadd.f32 -1.0, %v2210_v60 }
 0x1fc   :  { %v599_v63 = vsel %vm589_vm3, %v2116_v49, %v597_v61  ;;  %v598_v0 = vmul.f32 1.6732632, %v1705_v62  ;;  %v1112_v61 = vld [vmem:[%s2673_s7] sm:$0xf] }
 0x1fd   :  { %v601_v2 = vmul.f32 1.050701, %v599_v63  ;;  %v2191_v62 = vld [vmem:[%s2674_s8] sm:$0xff]   ;;  %v2192_v63 = vld [vmem:[%s2674_s8 + $0x8] sm:$0xff]  }
 0x1fe   :  { %v600_v1 = vsel %vm590_vm4, %v2117_v53, %v598_v0  ;;  %v2193_v0 = vld [vmem:[%s2674_s8 + $0x10] sm:$0xff]  }
 0x1ff   :  { %v602_v4 = vmul.f32 1.050701, %v600_v1  ;;  %v2194_v1 = vld [vmem:[%s2674_s8 + $0x18] sm:$0xff]  }
 0x201   :  { %v603_v5 = vpack.c.bf16 %v602_v4, %v601_v2  ;;  %v1781_v2 = vld [vmem:[%s2673_s7 + $0x8] sm:$0xf] }
 0x203   :  { %1973 = vmatpush3.bf16.msra.mxu0 %v603_v5  ;;  %2009 = vmatpush3.bf16.msra.mxu1 %v603_v5 }
 0x204   :  { %2026 = vmatprep.subr.bf16.mxu1 %v2239_v3  ;;  %1978 = vmatprep.subr.bf16.mxu0 %v2239_v3 }
 0x206   :  { %1975 = vmatmul.mubr.msk.bf16.vlgmr.msra.gmra.mrb[16].mxu0 %vm606_vm5, %v605_v6  ;;  %2011 = vmatmul.mubr.msk.bf16.vlgmr.msra.gmra.mrb[4].mxu1 %vm606_vm5, %v1728_v7 }
 0x207   :  { %2027 = vmatpush3.bf16.msra.mxu1 %v603_v5  ;;  %1979 = vmatpush3.bf16.msra.mxu0 %v2175_v8 }
 0x208   :  { %1980 = vmatprep.subr.bf16.mxu0 %v2239_v3  ;;  %1986 = vmatprep.mubr.msk.bf16.mxu0 %vm2240_vm0, %v2239_v3 }
 0x209   :  { %2028 = vmatprep.mubr.msk.bf16.mxu1 %vm2240_vm0, %v2239_v3  ;;  %2044 = vmatprep.subr.bf16.mxu1 %v2239_v3 }
 0x20b   :  { %1981 = vmatpush3.bf16.msra.mxu0 %v2176_v9  ;;  %v1766_v9 = vld [vmem:[%s2673_s7 + $0x4] sm:$0xf] }
 0x20c   :  { %1982 = vmatprep.subr.bf16.mxu0 %v2239_v3 }
 0x20e   :  { %2029 = vmatmul.mubr.msk.bf16.vlgmr.msra.gmra.mrb[8].mxu1 %vm606_vm5, %v1743_v12  ;;  %v2197_v12 = vld [vmem:[%s2674_s8 + $0x30] sm:$0xff]  }
 0x20f   :  { %1983 = vmatpush3.bf16.msra.mxu0 %v2177_v10  ;;  %2046 = vmatprep.mubr.msk.bf16.mxu1 %vm2240_vm0, %v2239_v3  ;;  %v2195_v10 = vld [vmem:[%s2674_s8 + $0x20] sm:$0xff]  }
 0x210   :  { %1984 = vmatprep.subr.bf16.mxu0 %v2239_v3 }
 0x213   :  { %1985 = vmatpush3.bf16.msra.mxu0 %v2178_v11  ;;  %v2196_v11 = vld [vmem:[%s2674_s8 + $0x28] sm:$0xff]  }
 0x214   :  { %1990 = vmatprep.subr.bf16.mxu0 %v2239_v3 }
 0x2d9   :  { %v644_v13 = vpop.f32.mrb[16].mxu0  ;;  %v895_v23 = vpop.f32.mrb[4].mxu1 }
 0x2da   :  { %v650_v14 = vpack.c.bf16 %v644_v13, %v644_v13  ;;  %v1976_v15 = vpop.f32.mrb[17].mxu0  ;;  %v2012_v24 = vpop.f32.mrb[5].mxu1  ;;  %v901_v40 = vpack.c.bf16 %v895_v23, %v895_v23  ;;  %v2198_v13 = vld [vmem:[%s2674_s8 + $0x38] sm:$0xff]  }
 0x2db   :  { %v647_v16 = vpop.f32.mrb[18].mxu0  ;;  %v898_v25 = vpop.f32.mrb[6].mxu1  ;;  %v2200_v24 = vld [vmem:[%s2674_s8 + $0x48] sm:$0xff]  }
 0x2dc   :  { %v1977_v17 = vpop.f32.mrb[19].mxu0  ;;  %1987 = vmatmul.mubr.msk.bf16.vlgmr.msra.gmra.mrb[20].mxu0 %vm138_vm2, %v650_v14  ;;  %v2013_v26 = vpop.f32.mrb[7].mxu1  ;;  %v2201_v25 = vld [vmem:[%s2674_s8 + $0x50] sm:$0xff]  }
 0x2dd   :  { %1991 = vmatpush3.bf16.msra.mxu0 %v603_v5  ;;  %1992 = vmatprep.mubr.msk.bf16.mxu0 %vm2240_vm0, %v2239_v3  ;;  %v2202_v26 = vld [vmem:[%s2674_s8 + $0x58] sm:$0xff]  }
 0x2de   :  { %1996 = vmatprep.subr.bf16.mxu0 %v2239_v3 }
 0x2e1   :  { %v1018_v27 = vpop.f32.mrb[8].mxu1 }
 0x2e2   :  { %v2030_v28 = vpop.f32.mrb[9].mxu1  ;;  %v1024_v45 = vpack.c.bf16 %v1018_v27, %v1018_v27 }
 0x2e3   :  { %v1021_v29 = vpop.f32.mrb[10].mxu1  ;;  %v1765_v28 = vld [vmem:[%s2675_s9] ss:$0 sm:$0xff] }
 0x2e4   :  { %1993 = vmatmul.mubr.msk.bf16.vlgmr.msra.gmra.mrb[24].mxu0 %vm606_vm5, %v1713_v18  ;;  %v2031_v30 = vpop.f32.mrb[11].mxu1 }
 0x2e5   :  { %1997 = vmatpush3.bf16.msra.mxu0 %v2179_v19  ;;  %2004 = vmatprep.mubr.msk.bf16.mxu0 %vm2240_vm0, %v2239_v3  ;;  %v2199_v19 = vld [vmem:[%s2674_s8 + $0x40] sm:$0xff]  }
 0x2e6   :  { %1998 = vmatprep.subr.bf16.mxu0 %v2239_v3 }
 0x2e9   :  { %1999 = vmatpush3.bf16.msra.mxu0 %v2180_v20 }
 0x2ea   :  { %2000 = vmatprep.subr.bf16.mxu0 %v2239_v3 }
 0x2ed   :  { %2001 = vmatpush3.bf16.msra.mxu0 %v2181_v21 }
 0x2ee   :  { %2002 = vmatprep.subr.bf16.mxu0 %v2239_v3 }
 0x2f1   :  { %2003 = vmatpush3.bf16.msra.mxu0 %v2182_v22 }
 0x2f2   :  { %2014 = vmatprep.subr.bf16.mxu0 %v2239_v3 }
 0x3b7   :  { %v772_v31 = vpop.f32.mrb[24].mxu0 }
 0x3b8   :  { %v778_v33 = vpack.c.bf16 %v772_v31, %v772_v31  ;;  %v1994_v34 = vpop.f32.mrb[25].mxu0 }
 0x3b9   :  { %v775_v35 = vpop.f32.mrb[26].mxu0 }
 0x3ba   :  { %v1995_v36 = vpop.f32.mrb[27].mxu0  ;;  %2005 = vmatmul.mubr.msk.bf16.vlgmr.msra.gmra.mrb[20].mxu0 %vm138_vm2, %v778_v33 }
 0x3bb   :  { %2015 = vmatpush3.bf16.msra.mxu0 %v2183_v32  ;;  %2022 = vmatprep.mubr.msk.bf16.mxu0 %vm2240_vm0, %v2239_v3 }
 0x3bc   :  { %2016 = vmatprep.subr.bf16.mxu0 %v2239_v3 }
 0x3bf   :  { %2017 = vmatpush3.bf16.msra.mxu0 %v2184_v37 }
 0x3c0   :  { %2018 = vmatprep.subr.bf16.mxu0 %v2239_v3 }
 0x3c3   :  { %2019 = vmatpush3.bf16.msra.mxu0 %v2185_v38 }
 0x3c4   :  { %2020 = vmatprep.subr.bf16.mxu0 %v2239_v3 }
 0x3c7   :  { %2021 = vmatpush3.bf16.msra.mxu0 %v2186_v39 }
 0x3c8   :  { %2032 = vmatprep.subr.bf16.mxu0 %v2239_v3 }
 0x3ca   :  { %2023 = vmatmul.mubr.msk.bf16.vlgmr.msra.gmra.mrb[20].mxu0 %vm138_vm2, %v901_v40 }
 0x3cb   :  { %2033 = vmatpush3.bf16.msra.mxu0 %v2187_v41  ;;  %2040 = vmatprep.mubr.msk.bf16.mxu0 %vm2240_vm0, %v2239_v3 }
 0x3cc   :  { %2034 = vmatprep.subr.bf16.mxu0 %v2239_v3 }
 0x3cf   :  { %2035 = vmatpush3.bf16.msra.mxu0 %v2188_v42 }
 0x3d0   :  { %2036 = vmatprep.subr.bf16.mxu0 %v2239_v3 }
 0x3d3   :  { %2037 = vmatpush3.bf16.msra.mxu0 %v2189_v43  ;;  %v1499_v43 = vld [vmem:[%s2676_s10] sm:$0xf] }
 0x3d4   :  { %2038 = vmatprep.subr.bf16.mxu0 %v2239_v3 }
 0x3d7   :  { %2039 = vmatpush3.bf16.msra.mxu0 %v2190_v44  ;;  %v2203_v44 = vld [vmem:[%s2677_s11] sm:$0xff]  }
 0x3d8   :  { %2080 = vmatprep.subr.bf16.mxu0 %v2239_v3 }
 0x3da   :  { %2041 = vmatmul.mubr.msk.bf16.vlgmr.msra.gmra.mrb[20].mxu0 %vm138_vm2, %v1024_v45  ;;  %v2204_v45 = vld [vmem:[%s2677_s11 + $0x8] sm:$0xff]  }
 0x3db   :  { %2082 = vmatprep.mubr.msk.bf16.mxu0 %vm2240_vm0, %v2239_v3 }
 0x4ad   :  { %v1095_v47 = vpop.f32.mrb[20].mxu0 }
 0x4ae   :  { %v2118_v48 = vadd.f32 %v1712_v46, %v1095_v47  ;;  %v2042_v49 = vpop.f32.mrb[21].mxu0  ;;  %v2205_v46 = vld [vmem:[%s2677_s11 + $0x10] sm:$0xff]   ;;  %v2206_v47 = vld [vmem:[%s2677_s11 + $0x18] sm:$0xff]   ;;  %s2215_s11 = scalar_lea.vmem %s1638_s30, 32 }
 0x4af   :  { %v1098_v50 = vpop.f32.mrb[22].mxu0  ;;  %p2216_p0 = scmp.ne.s32.totalorder %s1638_s30, %s2215_s11  ;;  %p2221_p2 = scmp.lt.s32.totalorder %s2215_s11, %s2215_s11 }
 0x4b0   :  { %v1102_v51 = vmin.f32 %v2118_v48, 0.0  ;;  %v2043_v52 = vpop.f32.mrb[23].mxu0  ;;  %vm1103_vm6 = vcmp.gt.f32.partialorder %v2118_v48, 0.0 }
 0x4b1   :  { %p2222_p3 = por %p2221_p2, %p2220_p1 }
 0x4b2   :  { %v1104_v53 = vmul.f32 1.442695, %v1102_v51 }
 0x4b3   :  { %p2223_p4 = pnand %p2222_p3, %p2216_p0 }
 0x4b4   :  { %2211 = vpow2.f32 %v1104_v53  ;;  %v1798_v53 = vld [vmem:[%s2678_s12] ss:$0 sm:$0xff] }
 0x4be   :  { %v2212_v54 = vpop.eup %2211 }
 0x4bf   :  { %v1758_v55 = vadd.f32 -1.0, %v2212_v54 }
 0x4c1   :  { %v1107_v56 = vmul.f32 1.6732632, %v1758_v55 }
 0x4c3   :  { %v1108_v57 = vsel %vm1103_vm6, %v2118_v48, %v1107_v56 }
 0x4c4   :  { %v1109_v58 = vmul.f32 1.050701, %v1108_v57 }
 0x4c6   :  { %v1110_v59 = vpack.c.bf16 %v1109_v58, %v1109_v58 }
 0x4c8   :  { %v1119_v60 = vsel %vm1117_vm7, %v1110_v59, 0 }
 0x4c9   :  { %2045 = vmatpush3.bf16.msra.mxu1 %v1119_v60  ;;  %2081 = vmatpush3.bf16.msra.mxu0 %v1119_v60 }
 0x4ca   :  { %2050 = vmatprep.subr.bf16.mxu1 %v2239_v3  ;;  %2098 = vmatprep.subr.bf16.mxu0 %v2239_v3 }
 0x4cc   :  { %2047 = vmatmul.mubr.msk.bf16.vlgmr.msra.gmra.mrb[12].mxu1 %vm1113_vm8, %v1112_v61  ;;  %2083 = vmatmul.mubr.msk.bf16.vlgmr.msra.gmra.mrb[28].mxu0 %vm1113_vm8, %v1781_v2 }
 0x4cd   :  { %2051 = vmatpush3.bf16.msra.mxu1 %v2191_v62  ;;  %2058 = vmatprep.mubr.msk.bf16.mxu1 %vm2240_vm0, %v2239_v3 }
 0x4ce   :  { %2052 = vmatprep.subr.bf16.mxu1 %v2239_v3  ;;  %2100 = vmatprep.mubr.msk.bf16.mxu0 %vm2240_vm0, %v2239_v3 }
 0x4d1   :  { %2053 = vmatpush3.bf16.msra.mxu1 %v2192_v63 }
 0x4d2   :  { %2054 = vmatprep.subr.bf16.mxu1 %v2239_v3 }
 0x4d5   :  { %2055 = vmatpush3.bf16.msra.mxu1 %v2193_v0 }
 0x4d6   :  { %2056 = vmatprep.subr.bf16.mxu1 %v2239_v3 }
 0x4d9   :  { %2057 = vmatpush3.bf16.msra.mxu1 %v2194_v1 }
 0x4da   :  { %2062 = vmatprep.subr.bf16.mxu1 %v2239_v3 }
 0x59f   :  { %v1155_v4 = vpop.f32.mrb[12].mxu1  ;;  %v1406_v14 = vpop.f32.mrb[28].mxu0 }
 0x5a0   :  { %v1161_v5 = vpack.c.bf16 %v1155_v4, %v1155_v4  ;;  %v2048_v6 = vpop.f32.mrb[13].mxu1  ;;  %v2084_v15 = vpop.f32.mrb[29].mxu0  ;;  %v1412_v27 = vpack.c.bf16 %v1406_v14, %v1406_v14 }
 0x5a1   :  { %v1158_v7 = vpop.f32.mrb[14].mxu1  ;;  %v1409_v16 = vpop.f32.mrb[30].mxu0 }
 0x5a2   :  { %v2049_v8 = vpop.f32.mrb[15].mxu1  ;;  %2059 = vmatmul.mubr.msk.bf16.vlgmr.msra.gmra.mrb[16].mxu1 %vm138_vm2, %v1161_v5  ;;  %v2085_v17 = vpop.f32.mrb[31].mxu0 }
 0x5a3   :  { %2063 = vmatpush3.bf16.msra.mxu1 %v1119_v60  ;;  %2064 = vmatprep.mubr.msk.bf16.mxu1 %vm2240_vm0, %v2239_v3 }
 0x5a4   :  { %2068 = vmatprep.subr.bf16.mxu1 %v2239_v3 }
 0x5aa   :  { %2065 = vmatmul.mubr.msk.bf16.vlgmr.msra.gmra.mrb[20].mxu1 %vm1113_vm8, %v1766_v9 }
 0x5ab   :  { %2069 = vmatpush3.bf16.msra.mxu1 %v2195_v10  ;;  %2076 = vmatprep.mubr.msk.bf16.mxu1 %vm2240_vm0, %v2239_v3 }
 0x5ac   :  { %2070 = vmatprep.subr.bf16.mxu1 %v2239_v3 }
 0x5af   :  { %2071 = vmatpush3.bf16.msra.mxu1 %v2196_v11 }
 0x5b0   :  { %2072 = vmatprep.subr.bf16.mxu1 %v2239_v3 }
 0x5b3   :  { %2073 = vmatpush3.bf16.msra.mxu1 %v2197_v12 }
 0x5b4   :  { %2074 = vmatprep.subr.bf16.mxu1 %v2239_v3 }
 0x5b7   :  { %2075 = vmatpush3.bf16.msra.mxu1 %v2198_v13 }
 0x5b8   :  { %2086 = vmatprep.subr.bf16.mxu1 %v2239_v3 }
 0x67d   :  { %v1283_v18 = vpop.f32.mrb[20].mxu1 }
 0x67e   :  { %v1289_v20 = vpack.c.bf16 %v1283_v18, %v1283_v18  ;;  %v2066_v21 = vpop.f32.mrb[21].mxu1 }
 0x67f   :  { %v1286_v22 = vpop.f32.mrb[22].mxu1 }
 0x680   :  { %v2067_v23 = vpop.f32.mrb[23].mxu1  ;;  %2077 = vmatmul.mubr.msk.bf16.vlgmr.msra.gmra.mrb[16].mxu1 %vm138_vm2, %v1289_v20 }
 0x681   :  { %2087 = vmatpush3.bf16.msra.mxu1 %v2199_v19  ;;  %2094 = vmatprep.mubr.msk.bf16.mxu1 %vm2240_vm0, %v2239_v3 }
 0x682   :  { %2088 = vmatprep.subr.bf16.mxu1 %v2239_v3 }
 0x685   :  { %2089 = vmatpush3.bf16.msra.mxu1 %v2200_v24 }
 0x686   :  { %2090 = vmatprep.subr.bf16.mxu1 %v2239_v3 }
 0x689   :  { %2091 = vmatpush3.bf16.msra.mxu1 %v2201_v25 }
 0x68a   :  { %2092 = vmatprep.subr.bf16.mxu1 %v2239_v3 }
 0x68d   :  { %2093 = vmatpush3.bf16.msra.mxu1 %v2202_v26 }
 0x690   :  { %2095 = vmatmul.mubr.msk.bf16.vlgmr.msra.gmra.mrb[16].mxu1 %vm138_vm2, %v1412_v27 }
 0x763   :  { %v1483_v29 = vpop.f32.mrb[16].mxu1 }
 0x764   :  { %v2119_v30 = vadd.f32 %v1765_v28, %v1483_v29  ;;  %v2096_v31 = vpop.f32.mrb[17].mxu1 }
 0x765   :  { %v1486_v32 = vpop.f32.mrb[18].mxu1 }
 0x766   :  { %v1490_v33 = vmin.f32 %v2119_v30, 0.0  ;;  %v2097_v34 = vpop.f32.mrb[19].mxu1  ;;  %vm1491_vm9 = vcmp.gt.f32.partialorder %v2119_v30, 0.0 }
 0x768   :  { %v1492_v35 = vmul.f32 1.442695, %v1490_v33 }
 0x76a   :  { %2213 = vpow2.f32 %v1492_v35 }
 0x774   :  { %v2214_v36 = vpop.eup %2213 }
 0x775   :  { %v1796_v37 = vadd.f32 -1.0, %v2214_v36 }
 0x777   :  { %v1495_v38 = vmul.f32 1.6732632, %v1796_v37 }
 0x779   :  { %v1496_v39 = vsel %vm1491_vm9, %v2119_v30, %v1495_v38 }
 0x77a   :  { %v1497_v40 = vmul.f32 1.050701, %v1496_v39 }
 0x77c   :  { %v1498_v41 = vpack.c.bf16 %v1497_v40, %v1497_v40 }
 0x77e   :  { %v1504_v42 = vsel %vm1117_vm7, %v1498_v41, 0 }
 0x77f   :  { %2099 = vmatpush3.bf16.msra.mxu0 %v1504_v42 }
 0x780   :  { %2104 = vmatprep.subr.bf16.mxu0 %v2239_v3 }
 0x782   :  { %2101 = vmatmul.mubr.msk.bf16.vlgmr.msra.gmra.mrb[32].mxu0 %vm1113_vm8, %v1499_v43 }
 0x783   :  { %2105 = vmatpush3.bf16.msra.mxu0 %v2203_v44  ;;  %2112 = vmatprep.mubr.msk.bf16.mxu0 %vm2240_vm0, %v2239_v3 }
 0x784   :  { %2106 = vmatprep.subr.bf16.mxu0 %v2239_v3 }
 0x787   :  { %2107 = vmatpush3.bf16.msra.mxu0 %v2204_v45 }
 0x788   :  { %2108 = vmatprep.subr.bf16.mxu0 %v2239_v3 }
 0x78b   :  { %2109 = vmatpush3.bf16.msra.mxu0 %v2205_v46 }
 0x78c   :  { %2110 = vmatprep.subr.bf16.mxu0 %v2239_v3 }
 0x78f   :  { %2111 = vmatpush3.bf16.msra.mxu0 %v2206_v47 }
 0x855   :  { %v1540_v48 = vpop.f32.mrb[32].mxu0 }
 0x856   :  { %v1546_v49 = vpack.c.bf16 %v1540_v48, %v1540_v48  ;;  %v2102_v50 = vpop.f32.mrb[33].mxu0 }
 0x857   :  { %v1543_v51 = vpop.f32.mrb[34].mxu0 }
 0x858   :  { %v2103_v52 = vpop.f32.mrb[35].mxu0  ;;  %2113 = vmatmul.mubr.msk.bf16.vlgmr.msra.gmra.mrb[36].mxu0 %vm138_vm2, %v1546_v49 }
 0x92b   :  { %v1623_v54 = vpop.f32.mrb[36].mxu0 }
 0x92c   :  { %v1624_v3 = vadd.f32 %v1798_v53, %v1623_v54  ;;  %v2114_v55 = vpop.f32.mrb[37].mxu0 }
 0x92d   :  { %v1626_v56 = vpop.f32.mrb[38].mxu0 }
 0x92e   :  { %v2115_v57 = vpop.f32.mrb[39].mxu0  ;;  %1630 = vst.msk [vmem:[#allocation2] sm:$0x3] %vm1629_vm10, %v1624_v3 }
 0x92f   :  { %2226 = shalt.err (!%p2223_p4)
}
 0x930   :  { %s2227_s12 = scalar_lea.hbm %s2679_s13, 32 }
 0x931   :  { %p2228_p5 = scmp.ne.s32.totalorder %s2679_s13, %s2227_s12  ;;  %p2231_p6 = scmp.lt.u32.totalorder %s2227_s12, %s2679_s13 }
 0x933   :  { %p2233_p7 = pnand %p2231_p6, %p2228_p5 }
 0x935   :  { %2236 = shalt.err (!%p2233_p7)
}
 0x936   :  { %1640 = dma.vmem_to_hbm [thread:$0]  %s1638_s30, 32, %s2679_s13, [#allocation3]  }
 0x937   :  { %2237 = dma.done.wait [#allocation3], 32  }
 0x938   :  { %2238 = vsyncadd [#allocation3], 4294967264 }
 0x939   :  { %1644 = vsyncpa [#allocation3], 1 }

</bundles_post_ra>
